<compile_context>
chip_gen: v6e
topology: v6e:2x2x1
jax: 0.10.0
libtpu: 0.0.40
codegen_flags: <defaults>
</compile_context>

<pallas_src>
import jax
import jax.numpy as jnp
import numpy as np
from jax.experimental import pallas as pl
from jax.experimental.pallas import tpu as pltpu

_LANE = 128
_SUBLANE = 8
_VMEM_SOFT_CAP = 40 << 20   # conservative: fits v7x's 64 MiB physical VMEM


def _round_up(x, m):
    return (x + m - 1) // m * m


def _hadamard_kernel(x1_ref, x2_ref,
                     w1_ref, b1_ref, w2_ref, b2_ref, w3_ref, b3_ref,
                     out_ref):
    # fc_1 / fc_2: bf16 operands on the MXU, f32 accumulation, f32 bias + relu.
    h1 = jnp.dot(x1_ref[...], w1_ref[...],
                 preferred_element_type=jnp.float32) + b1_ref[...]
    h1 = jnp.maximum(h1, 0.0)
    h2 = jnp.dot(x2_ref[...], w2_ref[...],
                 preferred_element_type=jnp.float32) + b2_ref[...]
    h2 = jnp.maximum(h2, 0.0)

    # Hadamard product in f32 on the VPU; cast only the MXU operand to bf16.
    h = (h1 * h2).astype(jnp.bfloat16)

    # fc_3 + relu.
    out = jnp.dot(h, w3_ref[...],
                  preferred_element_type=jnp.float32) + b3_ref[...]
    out_ref[...] = jnp.maximum(out, 0.0).astype(out_ref.dtype)


def preprocess_params(params):
    """One-time, call-invariant preprocessing of the Linear parameters.

    Pads the hidden dim to a multiple of 128 lanes (zero columns/rows keep the
    math exact) and casts the matmul operands (weights) to bfloat16.  Biases
    stay f32 (added after the f32-accumulated matmul).
    """
    D1, H = params["w1"].shape
    D2 = params["w2"].shape[0]
    Hp = _round_up(H, _LANE)

    def pad_w(w, rows):
        out = jnp.zeros((rows, Hp), jnp.bfloat16)
        return out.at[:w.shape[0], :H].set(w.astype(jnp.bfloat16))

    def pad_b(b):
        return jnp.zeros((1, Hp), jnp.float32).at[:, :H].set(
            b.astype(jnp.float32))

    return {
        "w1": pad_w(params["w1"], D1),   # (D1, Hp)  fc_1.weight.T
        "b1": pad_b(params["b1"]),       # (1, Hp)
        "w2": pad_w(params["w2"], D2),   # (D2, Hp)  fc_2.weight.T
        "b2": pad_b(params["b2"]),       # (1, Hp)
        "w3": pad_w(params["w3"], Hp),   # (Hp, Hp)  fc_3.weight.T (rows padded)
        "b3": pad_b(params["b3"]),       # (1, Hp)
        "hdim": H,
    }


def _choose_row_tile(N, D1, D2, Hp, block_rows):
    """Row-tile size: >=2 grid steps when possible (v7x megacore), multiple of
    8, shrunk until the estimated VMEM footprint fits a conservative budget."""
    if N <= _SUBLANE:
        TB = _SUBLANE
    else:
        TB = min(block_rows, _round_up(pl.cdiv(N, 2), _SUBLANE))
    TB = max(_SUBLANE, _round_up(TB, _SUBLANE))

    def vmem_need(tb):
        # Conservative (double-buffered-weight) estimate: covers the fallback
        # path where pipeline_mode=pl.Buffered(1) is unavailable.
        w_bytes = 2 * ((D1 + D2 + Hp) * Hp * 2 + 3 * Hp * 4)
        x_bytes = 2 * tb * (D1 + D2) * 2          # double-buffered bf16 inputs
        o_bytes = 2 * tb * Hp * 4                 # double-buffered f32 output
        t_bytes = 3 * tb * Hp * 4                 # h1 / h2 / h intermediates
        return w_bytes + x_bytes + o_bytes + t_bytes

    while TB > _SUBLANE and vmem_need(TB) > _VMEM_SOFT_CAP:
        TB = max(_SUBLANE, _round_up(TB // 2, _SUBLANE))
    # TODO(synk): for very large hdim (>= ~4k) tile the fc_3/out columns with a
    # second grid axis instead of shrinking the row tile further.
    vmem_limit = min(max(int(vmem_need(TB) * 1.5) + (4 << 20), 16 << 20),
                     48 << 20)
    return TB, vmem_limit


def hadamard_product_forward(x1, x2, pre, *, block_rows=512):
    """Pallas forward of HadamardProduct.

    Args:
      x1: [B, idim_1] or [B, L, idim_1]
      x2: [B, idim_2] or [B, L, idim_2]   (same leading dims as x1)
      pre: output of preprocess_params().
    Returns:
      relu(fc_3(relu(fc_1(x1)) * relu(fc_2(x2)))), shape x1.shape[:-1] + (hdim,)
    """
    lead_shape = x1.shape[:-1]
    assert x2.shape[:-1] == lead_shape, "x1/x2 leading dims must match"
    D1 = x1.shape[-1]
    D2 = x2.shape[-1]
    H = pre["hdim"]
    Hp = pre["w1"].shape[1]
    assert pre["w1"].shape[0] == D1 and pre["w2"].shape[0] == D2

    N = int(np.prod(lead_shape))
    x1f = x1.reshape(N, D1).astype(jnp.bfloat16)
    x2f = x2.reshape(N, D2).astype(jnp.bfloat16)

    # Rows padded only to a sublane multiple (cheap; usually a no-op).
    N8 = _round_up(N, _SUBLANE)
    if N8 != N:
        x1f = jnp.pad(x1f, ((0, N8 - N), (0, 0)))
        x2f = jnp.pad(x2f, ((0, N8 - N), (0, 0)))

    TB, vmem_limit = _choose_row_tile(N8, D1, D2, Hp, block_rows)
    grid = (pl.cdiv(N8, TB),)

    def make_call(single_buffer_weights):
        def const_spec(shape):
            if single_buffer_weights:
                # Constant index_map -> block never changes; one buffer is enough.
                return pl.BlockSpec(shape, lambda i: (0, 0),
                                    pipeline_mode=pl.Buffered(1))
            return pl.BlockSpec(shape, lambda i: (0, 0))

        in_specs = [
            pl.BlockSpec((TB, D1), lambda i: (i, 0)),   # x1 rows (bf16)
            pl.BlockSpec((TB, D2), lambda i: (i, 0)),   # x2 rows (bf16)
            const_spec((D1, Hp)),                       # fc_1 weight (bf16)
            const_spec((1, Hp)),                        # fc_1 bias   (f32)
            const_spec((D2, Hp)),                       # fc_2 weight
            const_spec((1, Hp)),                        # fc_2 bias
            const_spec((Hp, Hp)),                       # fc_3 weight
            const_spec((1, Hp)),                        # fc_3 bias
        ]
        out_specs = pl.BlockSpec((TB, Hp), lambda i: (i, 0))
        return pl.pallas_call(
            _hadamard_kernel,
            out_shape=jax.ShapeDtypeStruct((N8, Hp), jnp.float32),
            grid=grid,
            in_specs=in_specs,
            out_specs=out_specs,
            compiler_params=pltpu.CompilerParams(
                dimension_semantics=("parallel",),
                vmem_limit_bytes=vmem_limit),
        )

    args = (x1f, x2f, pre["w1"], pre["b1"], pre["w2"], pre["b2"],
            pre["w3"], pre["b3"])
    try:
        out_padded = jax.block_until_ready(make_call(True)(*args))
    except Exception:
        # Fallback if this jax version rejects pipeline_mode=pl.Buffered(1).
        out_padded = make_call(False)(*args)

    return out_padded[:N, :H].reshape(*lead_shape, H)


def init_params(rng, idim_1, idim_2, hdim):
    """Deterministic synthetic init (PyTorch-style uniform fan-in bounds).
    Linear weights are stored pre-transposed as (in_dim, out_dim)."""
    keys = jax.random.split(rng, 6)

    def uni(k, shape, fan_in):
        bound = 1.0 / np.sqrt(fan_in)
        return jax.random.uniform(k, shape, jnp.float32, -bound, bound)

    return {
        "w1": uni(keys[0], (idim_1, hdim), idim_1),   # fc_1.weight.T
        "b1": uni(keys[1], (1, hdim), idim_1),        # fc_1.bias
        "w2": uni(keys[2], (idim_2, hdim), idim_2),   # fc_2.weight.T
        "b2": uni(keys[3], (1, hdim), idim_2),        # fc_2.bias
        "w3": uni(keys[4], (hdim, hdim), hdim),       # fc_3.weight.T
        "b3": uni(keys[5], (1, hdim), hdim),          # fc_3.bias
    }


def hadamard_reference(x1, x2, params, dot_dtype=jnp.float32):
    """Pure-JAX reference of the PyTorch forward; dot_dtype=bfloat16 mirrors
    the kernel's MXU-operand precision (f32 accumulation either way)."""
    def lin(x, w, b):
        return jnp.dot(x.astype(dot_dtype), w.astype(dot_dtype),
                       preferred_element_type=jnp.float32) + b[0]

    h1 = jnp.maximum(lin(x1, params["w1"], params["b1"]), 0.0)
    h2 = jnp.maximum(lin(x2, params["w2"], params["b2"]), 0.0)
    h = (h1 * h2).astype(dot_dtype)
    out = jnp.dot(h, params["w3"].astype(dot_dtype),
                  preferred_element_type=jnp.float32) + params["b3"][0]
    return jnp.maximum(out, 0.0)


if __name__ == "__main__":
    B, L = 2, 8
    idim_1, idim_2, hdim = 16, 32, 32

    root = jax.random.PRNGKey(0)
    k_params, k_x1, k_x2 = jax.random.split(root, 3)

    params = init_params(k_params, idim_1, idim_2, hdim)
    pre = preprocess_params(params)          # one-time, call-invariant

    # 3-D case: [B, L, idim]
    x1 = jax.random.normal(k_x1, (B, L, idim_1), jnp.float32)
    x2 = jax.random.normal(k_x2, (B, L, idim_2), jnp.float32)

    out = hadamard_product_forward(x1, x2, pre)
    out = jax.block_until_ready(out)
    ref = hadamard_reference(x1, x2, params, dot_dtype=jnp.bfloat16)
    assert out.shape == (B, L, hdim)
    assert np.allclose(np.asarray(out), np.asarray(ref), atol=1e-2, rtol=1e-2)

    # 2-D case: [B, idim]
    out2 = hadamard_product_forward(x1[:, 0, :], x2[:, 0, :], pre)
    out2 = jax.block_until_ready(out2)
    ref2 = hadamard_reference(x1[:, 0, :], x2[:, 0, :], params,
                              dot_dtype=jnp.bfloat16)
    assert out2.shape == (B, hdim)
    assert np.allclose(np.asarray(out2), np.asarray(ref2), atol=1e-2, rtol=1e-2)

    print("KERNEL_OK")
</pallas_src>

<mosaic_0001>
module attributes {stable_mosaic.version = 11 : i64} {
  func.func @_hadamard_kernel(%arg0: i32, %arg1: memref<8x16xbf16, #tpu.memory_space<vmem>>, %arg2: memref<8x32xbf16, #tpu.memory_space<vmem>>, %arg3: memref<16x128xbf16, #tpu.memory_space<vmem>>, %arg4: memref<1x128xf32, #tpu.memory_space<vmem>>, %arg5: memref<32x128xbf16, #tpu.memory_space<vmem>>, %arg6: memref<1x128xf32, #tpu.memory_space<vmem>>, %arg7: memref<128x128xbf16, #tpu.memory_space<vmem>>, %arg8: memref<1x128xf32, #tpu.memory_space<vmem>>, %arg9: memref<8x128xf32, #tpu.memory_space<vmem>>) attributes {dimension_semantics = [#tpu.dimension_semantics<parallel>], iteration_bounds = array<i64: 2>, scalar_prefetch = 0 : i64, scratch_operands = 0 : i64, tpu.core_type = #tpu.core_type<tc>, window_params = [{transform_indices = @transform_0, window_bounds = array<i64: 8, 16>}, {transform_indices = @transform_1, window_bounds = array<i64: 8, 32>}, {pipeline_mode = #tpu.pipeline_mode<synchronous>, transform_indices = @transform_2, window_bounds = array<i64: 16, 128>}, {pipeline_mode = #tpu.pipeline_mode<synchronous>, transform_indices = @transform_3, window_bounds = array<i64: 1, 128>}, {pipeline_mode = #tpu.pipeline_mode<synchronous>, transform_indices = @transform_4, window_bounds = array<i64: 32, 128>}, {pipeline_mode = #tpu.pipeline_mode<synchronous>, transform_indices = @transform_5, window_bounds = array<i64: 1, 128>}, {pipeline_mode = #tpu.pipeline_mode<synchronous>, transform_indices = @transform_6, window_bounds = array<i64: 128, 128>}, {pipeline_mode = #tpu.pipeline_mode<synchronous>, transform_indices = @transform_7, window_bounds = array<i64: 1, 128>}, {transform_indices = @transform_8, window_bounds = array<i64: 8, 128>}]} {
    %c0 = arith.constant 0 : index
    %c0_0 = arith.constant 0 : index
    %0 = vector.load %arg1[%c0, %c0_0] : memref<8x16xbf16, #tpu.memory_space<vmem>>, vector<8x16xbf16>
    %c0_1 = arith.constant 0 : index
    %c0_2 = arith.constant 0 : index
    %1 = vector.load %arg3[%c0_1, %c0_2] : memref<16x128xbf16, #tpu.memory_space<vmem>>, vector<16x128xbf16>
    %cst = arith.constant dense<0.000000e+00> : vector<8x128xf32>
    %2 = tpu.matmul %0, %1, %cst {dimension_numbers = #tpu.dot_dimension_numbers<[1], [0], [0], [1], [0, 0, 1, 1], [], []>} : vector<8x16xbf16>, vector<16x128xbf16>, vector<8x128xf32> -> vector<8x128xf32>
    %c0_3 = arith.constant 0 : index
    %c0_4 = arith.constant 0 : index
    %3 = vector.load %arg4[%c0_3, %c0_4] : memref<1x128xf32, #tpu.memory_space<vmem>>, vector<1x128xf32>
    %4 = vector.broadcast %3 : vector<1x128xf32> to vector<8x128xf32>
    %5 = arith.addf %2, %4 : vector<8x128xf32>
    %cst_5 = arith.constant 0.000000e+00 : f32
    %6 = vector.broadcast %cst_5 : f32 to vector<8x128xf32>
    %7 = arith.maximumf %5, %6 : vector<8x128xf32>
    %c0_6 = arith.constant 0 : index
    %c0_7 = arith.constant 0 : index
    %8 = vector.load %arg2[%c0_6, %c0_7] : memref<8x32xbf16, #tpu.memory_space<vmem>>, vector<8x32xbf16>
    %c0_8 = arith.constant 0 : index
    %c0_9 = arith.constant 0 : index
    %9 = vector.load %arg5[%c0_8, %c0_9] : memref<32x128xbf16, #tpu.memory_space<vmem>>, vector<32x128xbf16>
    %cst_10 = arith.constant dense<0.000000e+00> : vector<8x128xf32>
    %10 = tpu.matmul %8, %9, %cst_10 {dimension_numbers = #tpu.dot_dimension_numbers<[1], [0], [0], [1], [0, 0, 1, 1], [], []>} : vector<8x32xbf16>, vector<32x128xbf16>, vector<8x128xf32> -> vector<8x128xf32>
    %c0_11 = arith.constant 0 : index
    %c0_12 = arith.constant 0 : index
    %11 = vector.load %arg6[%c0_11, %c0_12] : memref<1x128xf32, #tpu.memory_space<vmem>>, vector<1x128xf32>
    %12 = vector.broadcast %11 : vector<1x128xf32> to vector<8x128xf32>
    %13 = arith.addf %10, %12 : vector<8x128xf32>
    %cst_13 = arith.constant 0.000000e+00 : f32
    %14 = vector.broadcast %cst_13 : f32 to vector<8x128xf32>
    %15 = arith.maximumf %13, %14 : vector<8x128xf32>
    %16 = arith.mulf %7, %15 : vector<8x128xf32>
    %17 = arith.truncf %16 : vector<8x128xf32> to vector<8x128xbf16>
    %c0_14 = arith.constant 0 : index
    %c0_15 = arith.constant 0 : index
    %18 = vector.load %arg7[%c0_14, %c0_15] : memref<128x128xbf16, #tpu.memory_space<vmem>>, vector<128x128xbf16>
    %cst_16 = arith.constant dense<0.000000e+00> : vector<8x128xf32>
    %19 = tpu.matmul %17, %18, %cst_16 {dimension_numbers = #tpu.dot_dimension_numbers<[1], [0], [0], [1], [0, 0, 1, 1], [], []>} : vector<8x128xbf16>, vector<128x128xbf16>, vector<8x128xf32> -> vector<8x128xf32>
    %c0_17 = arith.constant 0 : index
    %c0_18 = arith.constant 0 : index
    %20 = vector.load %arg8[%c0_17, %c0_18] : memref<1x128xf32, #tpu.memory_space<vmem>>, vector<1x128xf32>
    %21 = vector.broadcast %20 : vector<1x128xf32> to vector<8x128xf32>
    %22 = arith.addf %19, %21 : vector<8x128xf32>
    %cst_19 = arith.constant 0.000000e+00 : f32
    %23 = vector.broadcast %cst_19 : f32 to vector<8x128xf32>
    %24 = arith.maximumf %22, %23 : vector<8x128xf32>
    %c0_20 = arith.constant 0 : index
    %c0_21 = arith.constant 0 : index
    %25 = vector.load %arg9[%c0_20, %c0_21] : memref<8x128xf32, #tpu.memory_space<vmem>>, vector<8x128xf32>
    tpu.vector_store %arg9[%c0_20, %c0_21], %24 {strides = array<i32>} : memref<8x128xf32, #tpu.memory_space<vmem>>, vector<8x128xf32>,
    return
  }
  func.func @transform_0(%arg0: i32) -> (i32, i32) {
    %c0_i32 = arith.constant 0 : i32
    %c0_i32_0 = arith.constant 0 : i32
    return %arg0, %c0_i32 : i32, i32
  }
  func.func @transform_1(%arg0: i32) -> (i32, i32) {
    %c0_i32 = arith.constant 0 : i32
    %c0_i32_0 = arith.constant 0 : i32
    return %arg0, %c0_i32 : i32, i32
  }
  func.func @transform_2(%arg0: i32) -> (i32, i32) {
    %c0_i32 = arith.constant 0 : i32
    %c0_i32_0 = arith.constant 0 : i32
    %c0_i32_1 = arith.constant 0 : i32
    return %c0_i32, %c0_i32_0 : i32, i32
  }
  func.func @transform_3(%arg0: i32) -> (i32, i32) {
    %c0_i32 = arith.constant 0 : i32
    %c0_i32_0 = arith.constant 0 : i32
    %c0_i32_1 = arith.constant 0 : i32
    return %c0_i32, %c0_i32_0 : i32, i32
  }
  func.func @transform_4(%arg0: i32) -> (i32, i32) {
    %c0_i32 = arith.constant 0 : i32
    %c0_i32_0 = arith.constant 0 : i32
    %c0_i32_1 = arith.constant 0 : i32
    return %c0_i32, %c0_i32_0 : i32, i32
  }
  func.func @transform_5(%arg0: i32) -> (i32, i32) {
    %c0_i32 = arith.constant 0 : i32
    %c0_i32_0 = arith.constant 0 : i32
    %c0_i32_1 = arith.constant 0 : i32
    return %c0_i32, %c0_i32_0 : i32, i32
  }
  func.func @transform_6(%arg0: i32) -> (i32, i32) {
    %c0_i32 = arith.constant 0 : i32
    %c0_i32_0 = arith.constant 0 : i32
    %c0_i32_1 = arith.constant 0 : i32
    return %c0_i32, %c0_i32_0 : i32, i32
  }
  func.func @transform_7(%arg0: i32) -> (i32, i32) {
    %c0_i32 = arith.constant 0 : i32
    %c0_i32_0 = arith.constant 0 : i32
    %c0_i32_1 = arith.constant 0 : i32
    return %c0_i32, %c0_i32_0 : i32, i32
  }
  func.func @transform_8(%arg0: i32) -> (i32, i32) {
    %c0_i32 = arith.constant 0 : i32
    %c0_i32_0 = arith.constant 0 : i32
    return %arg0, %c0_i32 : i32, i32
  }
}

module attributes {stable_mosaic.version = 11 : i64} {
  func.func @_hadamard_kernel(%arg0: i32, %arg1: memref<8x16xbf16, #tpu.memory_space<vmem>>, %arg2: memref<8x32xbf16, #tpu.memory_space<vmem>>, %arg3: memref<16x128xbf16, #tpu.memory_space<vmem>>, %arg4: memref<1x128xf32, #tpu.memory_space<vmem>>, %arg5: memref<32x128xbf16, #tpu.memory_space<vmem>>, %arg6: memref<1x128xf32, #tpu.memory_space<vmem>>, %arg7: memref<128x128xbf16, #tpu.memory_space<vmem>>, %arg8: memref<1x128xf32, #tpu.memory_space<vmem>>, %arg9: memref<8x128xf32, #tpu.memory_space<vmem>>) attributes {dimension_semantics = [#tpu.dimension_semantics<parallel>], iteration_bounds = array<i64: 2>, scalar_prefetch = 0 : i64, scratch_operands = 0 : i64, tpu.core_type = #tpu.core_type<tc>, window_params = [{transform_indices = @transform_0, window_bounds = array<i64: 8, 16>}, {transform_indices = @transform_1, window_bounds = array<i64: 8, 32>}, {pipeline_mode = #tpu.pipeline_mode<synchronous>, transform_indices = @transform_2, window_bounds = array<i64: 16, 128>}, {pipeline_mode = #tpu.pipeline_mode<synchronous>, transform_indices = @transform_3, window_bounds = array<i64: 1, 128>}, {pipeline_mode = #tpu.pipeline_mode<synchronous>, transform_indices = @transform_4, window_bounds = array<i64: 32, 128>}, {pipeline_mode = #tpu.pipeline_mode<synchronous>, transform_indices = @transform_5, window_bounds = array<i64: 1, 128>}, {pipeline_mode = #tpu.pipeline_mode<synchronous>, transform_indices = @transform_6, window_bounds = array<i64: 128, 128>}, {pipeline_mode = #tpu.pipeline_mode<synchronous>, transform_indices = @transform_7, window_bounds = array<i64: 1, 128>}, {transform_indices = @transform_8, window_bounds = array<i64: 8, 128>}]} {
    %c0 = arith.constant 0 : index
    %c0_0 = arith.constant 0 : index
    %0 = vector.load %arg1[%c0, %c0_0] : memref<8x16xbf16, #tpu.memory_space<vmem>>, vector<8x16xbf16>
    %c0_1 = arith.constant 0 : index
    %c0_2 = arith.constant 0 : index
    %1 = vector.load %arg3[%c0_1, %c0_2] : memref<16x128xbf16, #tpu.memory_space<vmem>>, vector<16x128xbf16>
    %cst = arith.constant dense<0.000000e+00> : vector<8x128xf32>
    %2 = tpu.matmul %0, %1, %cst {dimension_numbers = #tpu.dot_dimension_numbers<[1], [0], [0], [1], [0, 0, 1, 1], [], []>} : vector<8x16xbf16>, vector<16x128xbf16>, vector<8x128xf32> -> vector<8x128xf32>
    %c0_3 = arith.constant 0 : index
    %c0_4 = arith.constant 0 : index
    %3 = vector.load %arg4[%c0_3, %c0_4] : memref<1x128xf32, #tpu.memory_space<vmem>>, vector<1x128xf32>
    %4 = vector.broadcast %3 : vector<1x128xf32> to vector<8x128xf32>
    %5 = arith.addf %2, %4 : vector<8x128xf32>
    %cst_5 = arith.constant 0.000000e+00 : f32
    %6 = vector.broadcast %cst_5 : f32 to vector<8x128xf32>
    %7 = arith.maximumf %5, %6 : vector<8x128xf32>
    %c0_6 = arith.constant 0 : index
    %c0_7 = arith.constant 0 : index
    %8 = vector.load %arg2[%c0_6, %c0_7] : memref<8x32xbf16, #tpu.memory_space<vmem>>, vector<8x32xbf16>
    %c0_8 = arith.constant 0 : index
    %c0_9 = arith.constant 0 : index
    %9 = vector.load %arg5[%c0_8, %c0_9] : memref<32x128xbf16, #tpu.memory_space<vmem>>, vector<32x128xbf16>
    %cst_10 = arith.constant dense<0.000000e+00> : vector<8x128xf32>
    %10 = tpu.matmul %8, %9, %cst_10 {dimension_numbers = #tpu.dot_dimension_numbers<[1], [0], [0], [1], [0, 0, 1, 1], [], []>} : vector<8x32xbf16>, vector<32x128xbf16>, vector<8x128xf32> -> vector<8x128xf32>
    %c0_11 = arith.constant 0 : index
    %c0_12 = arith.constant 0 : index
    %11 = vector.load %arg6[%c0_11, %c0_12] : memref<1x128xf32, #tpu.memory_space<vmem>>, vector<1x128xf32>
    %12 = vector.broadcast %11 : vector<1x128xf32> to vector<8x128xf32>
    %13 = arith.addf %10, %12 : vector<8x128xf32>
    %cst_13 = arith.constant 0.000000e+00 : f32
    %14 = vector.broadcast %cst_13 : f32 to vector<8x128xf32>
    %15 = arith.maximumf %13, %14 : vector<8x128xf32>
    %16 = arith.mulf %7, %15 : vector<8x128xf32>
    %17 = arith.truncf %16 : vector<8x128xf32> to vector<8x128xbf16>
    %c0_14 = arith.constant 0 : index
    %c0_15 = arith.constant 0 : index
    %18 = vector.load %arg7[%c0_14, %c0_15] : memref<128x128xbf16, #tpu.memory_space<vmem>>, vector<128x128xbf16>
    %cst_16 = arith.constant dense<0.000000e+00> : vector<8x128xf32>
    %19 = tpu.matmul %17, %18, %cst_16 {dimension_numbers = #tpu.dot_dimension_numbers<[1], [0], [0], [1], [0, 0, 1, 1], [], []>} : vector<8x128xbf16>, vector<128x128xbf16>, vector<8x128xf32> -> vector<8x128xf32>
    %c0_17 = arith.constant 0 : index
    %c0_18 = arith.constant 0 : index
    %20 = vector.load %arg8[%c0_17, %c0_18] : memref<1x128xf32, #tpu.memory_space<vmem>>, vector<1x128xf32>
    %21 = vector.broadcast %20 : vector<1x128xf32> to vector<8x128xf32>
    %22 = arith.addf %19, %21 : vector<8x128xf32>
    %cst_19 = arith.constant 0.000000e+00 : f32
    %23 = vector.broadcast %cst_19 : f32 to vector<8x128xf32>
    %24 = arith.maximumf %22, %23 : vector<8x128xf32>
    %c0_20 = arith.constant 0 : index
    %c0_21 = arith.constant 0 : index
    %25 = vector.load %arg9[%c0_20, %c0_21] : memref<8x128xf32, #tpu.memory_space<vmem>>, vector<8x128xf32>
    tpu.vector_store %arg9[%c0_20, %c0_21], %24 {strides = array<i32>} : memref<8x128xf32, #tpu.memory_space<vmem>>, vector<8x128xf32>,
    return
  }
  func.func @transform_0(%arg0: i32) -> (i32, i32) {
    %c0_i32 = arith.constant 0 : i32
    %c0_i32_0 = arith.constant 0 : i32
    return %arg0, %c0_i32 : i32, i32
  }
  func.func @transform_1(%arg0: i32) -> (i32, i32) {
    %c0_i32 = arith.constant 0 : i32
    %c0_i32_0 = arith.constant 0 : i32
    return %arg0, %c0_i32 : i32, i32
  }
  func.func @transform_2(%arg0: i32) -> (i32, i32) {
    %c0_i32 = arith.constant 0 : i32
    %c0_i32_0 = arith.constant 0 : i32
    %c0_i32_1 = arith.constant 0 : i32
    return %c0_i32, %c0_i32_0 : i32, i32
  }
  func.func @transform_3(%arg0: i32) -> (i32, i32) {
    %c0_i32 = arith.constant 0 : i32
    %c0_i32_0 = arith.constant 0 : i32
    %c0_i32_1 = arith.constant 0 : i32
    return %c0_i32, %c0_i32_0 : i32, i32
  }
  func.func @transform_4(%arg0: i32) -> (i32, i32) {
    %c0_i32 = arith.constant 0 : i32
    %c0_i32_0 = arith.constant 0 : i32
    %c0_i32_1 = arith.constant 0 : i32
    return %c0_i32, %c0_i32_0 : i32, i32
  }
  func.func @transform_5(%arg0: i32) -> (i32, i32) {
    %c0_i32 = arith.constant 0 : i32
    %c0_i32_0 = arith.constant 0 : i32
    %c0_i32_1 = arith.constant 0 : i32
    return %c0_i32, %c0_i32_0 : i32, i32
  }
  func.func @transform_6(%arg0: i32) -> (i32, i32) {
    %c0_i32 = arith.constant 0 : i32
    %c0_i32_0 = arith.constant 0 : i32
    %c0_i32_1 = arith.constant 0 : i32
    return %c0_i32, %c0_i32_0 : i32, i32
  }
  func.func @transform_7(%arg0: i32) -> (i32, i32) {
    %c0_i32 = arith.constant 0 : i32
    %c0_i32_0 = arith.constant 0 : i32
    %c0_i32_1 = arith.constant 0 : i32
    return %c0_i32, %c0_i32_0 : i32, i32
  }
  func.func @transform_8(%arg0: i32) -> (i32, i32) {
    %c0_i32 = arith.constant 0 : i32
    %c0_i32_0 = arith.constant 0 : i32
    return %arg0, %c0_i32 : i32, i32
  }
}

</mosaic_0001>

<bundles_post_ra>
// kernel: tpu_custom_call.1
= control target key start
LH: loop header
LB: loop body
LE: loop exit
PB: predicated region body
PF: predicated region fallthrough
CT: control target
= control target key end

     0   :  { %s1469_s0 = inlined_call_operand.hbm [shape: bf16[16,16], index: 0, kind: input, shape index: {}]   ;;  %s1470_s1 = inlined_call_operand.hbm [shape: bf16[16,32], index: 1, kind: input, shape index: {}]   ;;  %s1471_s2 = inlined_call_operand.hbm [shape: bf16[16,128], index: 2, kind: input, shape index: {}]   ;;  %s1472_s3 = inlined_call_operand.vmem [shape: f32[1,128], index: 3, kind: input, shape index: {}]   ;;  %s1473_s4 = inlined_call_operand.hbm [shape: bf16[32,128], index: 4, kind: input, shape index: {}]   ;;  %s1474_s5 = inlined_call_operand.vmem [shape: f32[1,128], index: 5, kind: input, shape index: {}]   ;;  %s1475_s6 = inlined_call_operand.hbm [shape: bf16[128,128], index: 6, kind: input, shape index: {}]   ;;  %s1476_s7 = inlined_call_operand.vmem [shape: f32[1,128], index: 7, kind: input, shape index: {}]   ;;  %s1477_s8 = inlined_call_operand.hbm [shape: f32[16,128], index: 8, kind: output, shape index: {}]  }
   0x1   :  { %1483 = sst [smem:[#allocation19_spill]] %s1471_s2 }
   0x2   :  { %1484 = sst [smem:[#allocation20_spill]] %s1473_s4 }
   0x3   :  { %1485 = sst [smem:[#allocation21_spill]] %s1475_s6 }
   0x4   :  { %13 = vsyncpa [#allocation3], 0 }
   0x5   :  { %15 = vsyncpa [#allocation3 + $0x1], 0 }
   0x6   :  { %16 = vsyncpa [#allocation6], 0 }
   0x7   :  { %18 = vsyncpa [#allocation6 + $0x1], 0 }
   0x8   :  { %19 = vsyncpa [#allocation9], 0 }
   0x9   :  { %20 = vsyncpa [#allocation4], 0 }
   0xa   :  { %22 = vsyncpa [#allocation4 + $0x1], 0  ;;  %s1231_s27 = smov 0   ;;  %s1233_s28 = smov 0  }
   0xb   :  { %s1235_s29 = smov 0   ;;  %s1237_s30 = smov 0  }
   0xc LB: > { %1486 = sst [smem:[#allocation17_spill]] %s1170_s29  ;;  %s1252_s9 = sadd.s32 4294967295, %s1174_s30   ;;  %s1174_s30 = sphi %s1237_s30, %s1511_s30   ;;  %s1170_s29 = sphi %s1235_s29, %s1508_s29   ;;  %s1166_s28 = sphi %s1233_s28, %s1510_s28   ;;  %s1162_s27 = sphi %s1231_s27, %s1509_s27  }
   0xd   : > { %s782_s10 = sadd.s32 4294967294, %s1174_s30   ;;  %p48_p0 = scmp.ne.s32.totalorder %s1166_s28, %s1162_s27 }
   0xe   : > { %p1478_p1 = scmp.eq.s32.totalorder %s1252_s9, 0  ;;  %p230_p3 = scmp.eq.s32.totalorder %s782_s10, 1 }
   0xf   : > { %p783_p5 = scmp.ge.s32.totalorder %s1174_s30, 1  ;;  %p237_p7 = scmp.lt.s32.totalorder %s1174_s30, 3 }
  0x10   : > { %p1261_p4 = por %p1478_p1, %p48_p0  ;;  %p1266_p6 = por %p230_p3, %p48_p0 }
  0x11   : > { %p1271_p8 = pnand %p783_p5, %p237_p7  ;;  %s1176_s14 = smov [#allocation7]  }
  0x12   : > { %s1487_s11 = scalar_select %p1261_p4, 1, 0 }
  0x13   : > { %s1488_s12 = scalar_select %p1266_p6, 1, 0 }
  0x14   : > { %s1489_s13 = scalar_select %p1271_p8, 1, 0 }
  0x15   : > { %s249_s15 = sshll.u32 %s1176_s14, 4  ;;  %p885_p9 = pneg %p1271_p8  ;;  %s250_s15 = int_to_ptr.vmem [resolvable:$true] %s249_s15 }
  0x16   : > { %s1177_s17 = smov [#allocation8]   ;;  %s1178_s19 = smov [#allocation10]  }
  0x17   : > { %p1280_p11 = pnand %p885_p9, %p1478_p1  ;;  %s265_s18 = sshll.u32 %s1177_s17, 4  ;;  %s266_s18 = int_to_ptr.vmem [resolvable:$true] %s265_s18 }
  0x18   : > { %s281_s20 = sshll.u32 %s1178_s19, 4  ;;  %s975_s21 = scalar_lea.vmem %s250_s15, 128  ;;  %s282_s20 = int_to_ptr.vmem [resolvable:$true] %s281_s20 }
  0x19   : > { %p966_p12 = pneg %p1280_p11  ;;  %p976_p13 = scmp.ne.s32.totalorder %s250_s15, %s975_s21 }
  0x1a   : > { %p983_p5 = scmp.lt.s32.totalorder %s250_s15, %s250_s15  ;;  %p984_p7 = scmp.lt.s32.totalorder %s975_s21, %s975_s21 }
  0x1b   : > { %p978_p0 = pnand %p976_p13, %p966_p12 }
  0x1c   : > { %p985_p9 = por %p984_p7, %p983_p5 }
  0x1d   : > { %p979_p3 = pneg %p978_p0 }
  0x1f   : > { %p986_p10 = pnand %p985_p9, %p979_p3 }
  0x21   : > { %989 = shalt.err (!%p986_p10)
}
  0x22   : > { %s1179_s22 = smov 64   ;;  %s1180_s23 = smov 4  }
  0x23   : > { %s1491_s2 = sld [smem:[#allocation19_spill]]  ;;  %s1001_s26 = scalar_lea.vmem %s266_s18, 256 }
  0x24   : > { %p1002_p1 = scmp.ne.s32.totalorder %s266_s18, %s1001_s26  ;;  %p1009_p2 = scmp.lt.s32.totalorder %s266_s18, %s266_s18 }
  0x25   : > { %p1010_p6 = scmp.lt.s32.totalorder %s1001_s26, %s1001_s26 }
  0x26   : > { %p1004_p13 = pnand %p1002_p1, %p966_p12 }
  0x27   : > { %p1011_p5 = por %p1010_p6, %p1009_p2 }
  0x28   : > { %p1005_p0 = pneg %p1004_p13 }
  0x29   : > { %888 = dma.hbm_to_vmem [thread:$0]  (!%p1280_p11), %s1491_s2, 128, %s250_s15, [#allocation6], %s1179_s22, %s1179_s22, %s1180_s23  }
  0x2a   : > { %p1012_p3 = pnand %p1011_p5, %p1005_p0 }
  0x2c   : > { %1015 = shalt.err (!%p1012_p3)
}
  0x2d   : > { %s1492_s4 = sld [smem:[#allocation20_spill]]  ;;  %s1027_s15 = scalar_lea.vmem %s282_s20, 1024 }
  0x2e   : > { %p1028_p10 = scmp.ne.s32.totalorder %s282_s20, %s1027_s15  ;;  %p1035_p9 = scmp.lt.s32.totalorder %s282_s20, %s282_s20 }
  0x2f   : > { %p1036_p13 = scmp.lt.s32.totalorder %s1027_s15, %s1027_s15 }
  0x30   : > { %p1030_p7 = pnand %p1028_p10, %p966_p12 }
  0x31   : > { %p1037_p4 = por %p1036_p13, %p1035_p9 }
  0x32   : > { %p1031_p1 = pneg %p1030_p7 }
  0x33   : > { %891 = dma.hbm_to_vmem [thread:$0]  (!%p1280_p11), %s1492_s4, 256, %s266_s18, [#allocation9], %s1179_s22, %s1179_s22, %s1180_s23  }
  0x34   : > { %p1038_p2 = pnand %p1037_p4, %p1031_p1 }
  0x36   : > { %1041 = shalt.err (!%p1038_p2)
}
  0x37   : > { %s1493_s6 = sld [smem:[#allocation21_spill]]  ;;  %s1311_s18 = sadd.s32 1, %s1174_s30  }
  0x38   : > { %s32_s21 = ssub.s32 %s1174_s30, %s1311_s18  ;;  %s35_s16 = sadd.s32 1, %s1170_s29 }
  0x39   : > { %p33_p4 = scmp.eq.s32.totalorder %s32_s21, 0  ;;  %p42_p6 = scmp.ne.s32.totalorder %s1170_s29, %s1166_s28 }
  0x3a   : > { %p43_p12 = scmp.eq.s32.totalorder %s1174_s30, 0  ;;  %p909_p0 = scmp.lt.s32.totalorder %s1174_s30, 2 }
  0x3b   : > { %s1321_s24 = scalar_select %p33_p4, %s1170_s29, %s35_s16  }
  0x3c   : > { %p44_p5 = por %p43_p12, %p42_p6  ;;  %p1495_p3 = scmp.eq.s32.totalorder %s1252_s9, 1 }
  0x3d   : > { %894 = dma.hbm_to_vmem [thread:$0]  (!%p1280_p11), %s1493_s6, 1024, %s282_s20, [#allocation9], %s1179_s22, %s1179_s22, %s1180_s23  }
  0x3e   : > { %1494 = sst [smem:[#allocation18_spill]] %s1321_s24  ;;  %p1325_p10 = por %p1495_p3, %p42_p6 }
  0x3f   : > { %s298_s26 = sand.u32 1, %s1170_s29   ;;  %s789_s10 = sshll.u32 %s1174_s30, 6 }
  0x40   : > { %s1496_s25 = scalar_select %p1325_p10, 1, 0 }
  0x41   : > { %s1331_s20 = sshll.u32 %s298_s26, 2  ;;  %s1336_s14 = scalar_lea.hbm %s1469_s0, %s789_s10 }
  0x42   : > { %s302_s15 = scalar_lea.vmem [#allocation2], %s1331_s20  ;;  %p1339_p11 = pnand %p909_p0, %p44_p5 }
  0x43   : > { %s309_s17 = sshll.u32 %s302_s15, 4  ;;  %s1346_s2 = scalar_lea.hbm %s1470_s1, %s789_s10  ;;  %s310_s17 = int_to_ptr.vmem [resolvable:$true] %s309_s17 }
  0x44   : > { %s299_s22 = scalar_lea.sflag [#allocation3], %s298_s26  ;;  %s1042_s23 = scalar_lea.hbm %s1336_s14, 64 }
  0x45   : > { %p1043_p7 = scmp.ne.s32.totalorder %s1336_s14, %s1042_s23  ;;  %p1044_p1 = pneg %p1339_p11 }
  0x46   : > { %s1047_s6 = scalar_lea.hbm %s1469_s0, 128  ;;  %p1048_p2 = scmp.lt.s32.totalorder %s1336_s14, %s1469_s0 }
  0x47   : > { %p1045_p9 = pnand %p1044_p1, %p1043_p7  ;;  %p1049_p4 = scmp.lt.s32.totalorder %s1047_s6, %s1042_s23 }
  0x49   : > { %p1046_p13 = pneg %p1045_p9  ;;  %p1050_p6 = por %p1049_p4, %p1048_p2 }
  0x4b   : > { %p1051_p12 = pnand %p1050_p6, %p1046_p13 }
  0x4d   : > { %1054 = shalt.err (!%p1051_p12)
}
  0x4e   : > { %s1055_s26 = scalar_lea.vmem %s310_s17, 64  ;;  %s1181_s10 = smov [#allocation2]  }
  0x4f   : > { %p1056_p0 = scmp.ne.s32.totalorder %s310_s17, %s1055_s26  ;;  %s1060_s21 = sshll.u32 %s1181_s10, 4  ;;  %s1061_s21 = int_to_ptr.vmem [resolvable:$false] %s1060_s21 }
  0x50   : > { %s1062_s4 = scalar_lea.vmem %s1061_s21, 128  ;;  %p1063_p7 = scmp.lt.s32.totalorder %s310_s17, %s1061_s21 }
  0x51   : > { %p1058_p5 = pnand %p1056_p0, %p1044_p1  ;;  %p1064_p9 = scmp.lt.s32.totalorder %s1062_s4, %s1055_s26 }
  0x53   : > { %p1059_p3 = pneg %p1058_p5  ;;  %p1065_p10 = por %p1064_p9, %p1063_p7 }
  0x55   : > { %p1066_p8 = pnand %p1065_p10, %p1059_p3 }
  0x57   : > { %1069 = shalt.err (!%p1066_p8)
}
  0x58   : > { %898 = dma.hbm_to_vmem [thread:$0]  (!%p1339_p11), %s1336_s14, 64, %s310_s17, %s299_s22  }
  0x59   : > { %s316_s6 = sand.u32 1, %s1174_s30   ;;  %s320_s29 = scalar_lea.vmem [#allocation5], %s1331_s20 }
  0x5a   : > { %s327_s24 = sshll.u32 %s320_s29, 4  ;;  %s317_s16 = scalar_lea.sflag [#allocation6], %s316_s6  ;;  %s328_s24 = int_to_ptr.vmem [resolvable:$true] %s327_s24 }
  0x5b   : > { %s1070_s23 = scalar_lea.hbm %s1346_s2, 64  ;;  %s1075_s10 = scalar_lea.hbm %s1470_s1, 128 }
  0x5c   : > { %p1071_p13 = scmp.ne.s32.totalorder %s1346_s2, %s1070_s23  ;;  %p1076_p2 = scmp.lt.s32.totalorder %s1346_s2, %s1470_s1 }
  0x5d   : > { %p1077_p4 = scmp.lt.s32.totalorder %s1075_s10, %s1070_s23 }
  0x5e   : > { %p1073_p8 = pnand %p1071_p13, %p1044_p1 }
  0x5f   : > { %p1078_p6 = por %p1077_p4, %p1076_p2 }
  0x60   : > { %p1074_p10 = pneg %p1073_p8 }
  0x62   : > { %p1079_p12 = pnand %p1078_p6, %p1074_p10 }
  0x64   : > { %1082 = shalt.err (!%p1079_p12)
}
  0x65   : > { %s1083_s20 = scalar_lea.vmem %s328_s24, 64  ;;  %s1182_s14 = smov [#allocation5]  }
  0x66   : > { %p1084_p0 = scmp.ne.s32.totalorder %s328_s24, %s1083_s20  ;;  %s1088_s17 = sshll.u32 %s1182_s14, 4  ;;  %s1089_s17 = int_to_ptr.vmem [resolvable:$false] %s1088_s17 }
  0x67   : > { %s1090_s22 = scalar_lea.vmem %s1089_s17, 128  ;;  %p1091_p7 = scmp.lt.s32.totalorder %s328_s24, %s1089_s17 }
  0x68   : > { %p1086_p5 = pnand %p1084_p0, %p1044_p1  ;;  %p1092_p9 = scmp.lt.s32.totalorder %s1090_s22, %s1083_s20 }
  0x6a   : > { %p1087_p3 = pneg %p1086_p5  ;;  %p1093_p13 = por %p1092_p9, %p1091_p7 }
  0x6c   : > { %p1094_p8 = pnand %p1093_p13, %p1087_p3 }
  0x6e   : > { %1097 = shalt.err (!%p1094_p8)
}
  0x6f   : > { %901 = dma.hbm_to_vmem [thread:$0]  (!%p1339_p11), %s1346_s2, 64, %s328_s24, %s317_s16  }
  0x70   : > { %p1498_p10 = scmp.ne.s32.totalorder %s1489_s13, 0 }
  0x71   : > { %s1391_s6 = sand.u32 (!%p1498_p10), 1, %s1166_s28   ;;  %p1499_p1 = scmp.ne.s32.totalorder (!%p1498_p10), %s1487_s11, 0 }
  0x72   : > { %336 = sbr.rel (%p1498_p10) target bundleno = 556 (0x22c), region = 52  ;;  %s793_s29 = sshll.u32 (!%p1498_p10), %s1391_s6, 2 }
  0x73   : > { %s339_s23 = scalar_lea.sflag (!%p1498_p10), [#allocation3], %s1391_s6  ;;  %s342_s15 = scalar_lea.vmem (!%p1498_p10), [#allocation2], %s793_s29 }
  0x77   : > { %1141 = dma.done.wait (%p1499_p1), %s339_s23, 64  }
  0x78   : > { %1143 = vsyncadd (%p1499_p1), %s339_s23, 4294967232  ;;  %s347_s2 = sand.u32 1, %s1252_s9   ;;  %s351_s13 = scalar_lea.vmem [#allocation5], %s793_s29 }
  0x79   : > { %s348_s19 = scalar_lea.sflag [#allocation6], %s347_s2 }
  0x7a   : > { %1145 = dma.done.wait (%p1499_p1), %s348_s19, 64  }
  0x7b   : > { %1147 = vsyncadd (%p1499_p1), %s348_s19, 4294967232  ;;  %p1500_p11 = scmp.eq.s32.totalorder %s1252_s9, 0 }
  0x7d   : > { %1149 = dma.done.wait (%p1500_p11), [#allocation6], 128   ;;  %p1501_p2 = pmov %p1500_p11 }
  0x7f   : > { %1151 = vsyncadd (%p1501_p2), [#allocation6], 4294967168  ;;  %p1502_p4 = pmov %p1501_p2 }
  0x80   : > { %p1503_p6 = pmov %p1501_p2 }
  0x81   : > { %1153 = dma.done.wait (%p1502_p4), [#allocation9], 1280  }
  0x82   : > { %1155 = vsyncadd (%p1503_p6), [#allocation9], 4294966016  ;;  %v1183_v0 = vmov 0.0   ;;  %vm1184_vm0 = vmmov 0   ;;  %v953_v1 = vld [vmem:[#allocation7] sm:$0xff]   ;;  %vm418_vm1 = vcmask 130048  }
  0x83   : > { %833 = vmatprep.subr.bf16.mxu1 %v1183_v0  ;;  %835 = vmatprep.mubr.msk.bf16.mxu1 %vm1184_vm0, %v1183_v0  ;;  %v402_v2 = vld [vmem:[%s342_s15] sm:$0xf]  ;;  %v955_v5 = vld [vmem:[#allocation8] sm:$0xff]   ;;  %vm487_vm2 = vcmask 261120   ;;  %v463_v7 = vld [vmem:[%s351_s13] sm:$0xf] }
  0x84   : > { %847 = vmatprep.subr.bf16.mxu0 %v1183_v0  ;;  %863 = vmatprep.mubr.msk.bf16.mxu0 %vm1184_vm0, %v1183_v0  ;;  %v954_v3 = vld [vmem:[#allocation8 + $0x8] sm:$0xff]   ;;  %v957_v6 = vld [vmem:[#allocation10 + $0x30] sm:$0xff]   ;;  %v958_v8 = vld [vmem:[#allocation10 + $0x28] sm:$0xff]   ;;  %s798_s10 = sshll.u32 %s1391_s6, 3  ;;  %s816_s20 = sshll.u32 %s1252_s9, 7 }
  0x85   : > { %834 = vmatpush3.bf16.msra.mxu1 %v953_v1  ;;  %v956_v4 = vld [vmem:[#allocation10 + $0x38] sm:$0xff]   ;;  %v959_v9 = vld [vmem:[#allocation10 + $0x20] sm:$0xff]   ;;  %v961_v11 = vld [vmem:[#allocation10 + $0x10] sm:$0xff]   ;;  %s400_s14 = scalar_lea.vmem [#allocation11], %s798_s10  ;;  %s1426_s23 = scalar_lea.hbm %s1477_s8, %s816_s20 }
  0x86   : > { %839 = vmatprep.subr.bf16.mxu1 %v1183_v0  ;;  %848 = vmatpush3.bf16.msra.mxu0 %v956_v4  ;;  %v960_v10 = vld [vmem:[#allocation10 + $0x18] sm:$0xff]   ;;  %v962_v12 = vld [vmem:[#allocation10 + $0x8] sm:$0xff]   ;;  %v963_v13 = vld [vmem:[#allocation10] sm:$0xff]   ;;  %s661_s17 = sshll.u32 %s400_s14, 4  ;;  %s648_s15 = scalar_lea.sflag [#allocation4], %s1391_s6  ;;  %s1428_s17 = int_to_ptr.vmem [resolvable:$true] %s661_s17 }
  0x87   : > { %849 = vmatprep.subr.bf16.mxu0 %v1183_v0  ;;  %v799_v16 = vld [vmem:[%s1472_s3] ss:$0 sm:$0xff]  ;;  %s1098_s9 = scalar_lea.vmem %s1428_s17, 128  ;;  %p1504_p0 = scmp.ne.s32.totalorder %s1496_s25, 0 }
  0x88   : > { %836 = vmatmul.mubr.msk.bf16.vlgmr.msra.gmra.mxu1 %vm418_vm1, %v402_v2  ;;  %v802_v19 = vld [vmem:[%s1474_s5] ss:$0 sm:$0xff]  ;;  %p1099_p12 = scmp.ne.s32.totalorder %s1428_s17, %s1098_s9  ;;  %s1185_s2 = smov [#allocation11]  }
  0x89   : > { %840 = vmatpush3.bf16.msra.mxu1 %v954_v3  ;;  %843 = vmatprep.mubr.msk.bf16.mxu1 %vm1184_vm0, %v1183_v0  ;;  %v806_v30 = vld [vmem:[%s1476_s7] ss:$0 sm:$0xff]  ;;  %s1102_s19 = sshll.u32 %s1185_s2, 4  ;;  %s1103_s19 = int_to_ptr.vmem [resolvable:$false] %s1102_s19 }
  0x8a   : > { %841 = vmatprep.subr.bf16.mxu1 %v1183_v0  ;;  %850 = vmatpush3.bf16.msra.mxu0 %v957_v6  ;;  %p1100_p5 = pnand %p1099_p12, %p1504_p0  ;;  %s1104_s13 = scalar_lea.vmem %s1103_s19, 256 }
  0x8b   : > { %851 = vmatprep.subr.bf16.mxu0 %v1183_v0  ;;  %p1105_p7 = scmp.lt.s32.totalorder %s1428_s17, %s1103_s19  ;;  %p1106_p9 = scmp.lt.s32.totalorder %s1104_s13, %s1098_s9 }
  0x8c   : > { %p1101_p3 = pneg %p1100_p5 }
  0x8d   : > { %842 = vmatpush3.bf16.msra.mxu1 %v955_v5  ;;  %p1107_p13 = por %p1106_p9, %p1105_p7 }
  0x8e   : > { %852 = vmatpush3.bf16.msra.mxu0 %v958_v8 }
  0x8f   : > { %853 = vmatprep.subr.bf16.mxu0 %v1183_v0  ;;  %p1108_p8 = pnand %p1107_p13, %p1101_p3 }
  0x90   : > { %844 = vmatmul.mubr.msk.bf16.vlgmr.msra.gmra.mxu1 %vm487_vm2, %v463_v7 }
  0x92   : > { %854 = vmatpush3.bf16.msra.mxu0 %v959_v9 }
  0x93   : > { %855 = vmatprep.subr.bf16.mxu0 %v1183_v0 }
  0x96   : > { %856 = vmatpush3.bf16.msra.mxu0 %v960_v10 }
  0x97   : > { %857 = vmatprep.subr.bf16.mxu0 %v1183_v0 }
  0x9a   : > { %858 = vmatpush3.bf16.msra.mxu0 %v961_v11 }
  0x9b   : > { %859 = vmatprep.subr.bf16.mxu0 %v1183_v0 }
  0x9e   : > { %860 = vmatpush3.bf16.msra.mxu0 %v962_v12 }
  0x9f   : > { %861 = vmatprep.subr.bf16.mxu0 %v1183_v0 }
  0xa2   : > { %862 = vmatpush3.bf16.msra.mxu0 %v963_v13 }
 0x148   : > { %v456_v14 = vpop.f32.mrf.mxu1 }
 0x149   : > { %v457_v20 = vadd.f32 %v799_v16, %v456_v14 }
 0x14a   : > { %v837_v15 = vpop.f32.mrf.mxu1 }
 0x14b   : > { %v462_v24 = vmax.f32 %v457_v20, 0.0 }
 0x14c   : > { %v459_v17 = vpop.f32.mrf.mxu1 }
 0x14e   : > { %v838_v18 = vpop.f32.mrf.mxu1 }
 0x150   : > { %v525_v21 = vpop.f32.mrf.mxu1 }
 0x151   : > { %v526_v22 = vadd.f32 %v802_v19, %v525_v21 }
 0x152   : > { %v845_v23 = vpop.f32.mrf.mxu1 }
 0x153   : > { %v531_v25 = vmax.f32 %v526_v22, 0.0 }
 0x154   : > { %v528_v26 = vpop.f32.mrf.mxu1 }
 0x155   : > { %v532_v27 = vmul.f32 %v531_v25, %v462_v24 }
 0x156   : > { %v846_v28 = vpop.f32.mrf.mxu1 }
 0x157   : > { %v533_v29 = vpack.c.bf16 %v532_v27, %v532_v27 }
 0x159   : > { %864 = vmatmul.mubr.bf16.vlgmr.msra.gmra.mxu0 %v533_v29 }
 0x219   : > { %v639_v31 = vpop.f32.mrf.mxu0 }
 0x21a   : > { %v640_v32 = vadd.f32 %v806_v30, %v639_v31 }
 0x21b   : > { %v865_v33 = vpop.f32.mrf.mxu0 }
 0x21c   : > { %v645_v34 = vmax.f32 %v640_v32, 0.0 }
 0x21d   : > { %v642_v35 = vpop.f32.mrf.mxu0 }
 0x21e   : > { %646 = vst [vmem:[%s400_s14] sm:$0xff] %v645_v34 }
 0x21f   : > { %v866_v36 = vpop.f32.mrf.mxu0 }
 0x220   : > { %1111 = shalt.err (!%p1108_p8)
}
 0x221   : > { %s1112_s11 = scalar_lea.hbm %s1426_s23, 128  ;;  %s1116_s16 = scalar_lea.hbm %s1477_s8, 256 }
 0x222   : > { %p1113_p10 = scmp.ne.s32.totalorder %s1426_s23, %s1112_s11  ;;  %p1117_p2 = scmp.lt.s32.totalorder %s1426_s23, %s1477_s8 }
 0x223   : > { %p1118_p4 = scmp.lt.s32.totalorder %s1116_s16, %s1112_s11 }
 0x224   : > { %p1114_p1 = pnand %p1113_p10, %p1504_p0 }
 0x225   : > { %p1119_p6 = por %p1118_p4, %p1117_p2 }
 0x226   : > { %p1115_p11 = pneg %p1114_p1 }
 0x228   : > { %p1120_p12 = pnand %p1119_p6, %p1115_p11 }
 0x22a   : > { %1123 = shalt.err (!%p1120_p12)
}
 0x22b   : > { %883 = dma.vmem_to_hbm [thread:$0]  (%p1504_p0), %s1428_s17, 128, %s1426_s23, %s648_s15  }
 0x22c PF: > { %s673_s21 = sand.u32 1, %s1162_s27   ;;  %p1505_p5 = scmp.ne.s32.totalorder %s1488_s12, 0 }
 0x22d   : > { %p1506_p3 = scmp.ge.s32.totalorder %s1174_s30, 2  ;;  %s674_s4 = scalar_lea.sflag [#allocation4], %s673_s21 }
 0x22f   : > { %p903_p7 = pnand %p1506_p3, %p1505_p5 }
 0x231   : > { %p904_p9 = pneg %p903_p7 }
 0x233   : > { %1157 = dma.done.wait (%p904_p9), %s674_s4, 128  }
 0x234   : > { %1159 = vsyncadd (%p904_p9), %s674_s4, 4294967168  ;;  %s1507_s20 = sld [smem:[#allocation17_spill]]  ;;  %p25_p13 = scmp.ge.s32.totalorder %s1311_s18, 4  }
 0x235   : > { %s1508_s29 = sld [smem:[#allocation18_spill]]  ;;  %s1509_s27 = smov %s1166_s28 }
 0x236   : > { %s1511_s30 = smov %s1311_s18  ;;  %27 = sbr.rel (!%p25_p13) target bundleno = 12 (0xc), region = 122 }
 0x23a   : > { %s1510_s28 = smov %s1507_s20 }
 0x23b   :  { %679 = vsyncpa [#allocation3], 1 }
 0x23c   :  { %681 = vsyncpa [#allocation3 + $0x1], 1 }
 0x23d   :  { %682 = vsyncpa [#allocation6], 1 }
 0x23e   :  { %684 = vsyncpa [#allocation6 + $0x1], 1 }
 0x23f   :  { %685 = vsyncpa [#allocation9], 1 }
 0x240   :  { %686 = vsyncpa [#allocation4], 1 }
 0x241   :  { %688 = vsyncpa [#allocation4 + $0x1], 1 }

// kernel: tpu_custom_call.1
= control target key start
LH: loop header
LB: loop body
LE: loop exit
PB: predicated region body
PF: predicated region fallthrough
CT: control target
= control target key end

     0   :  { %s1469_s0 = inlined_call_operand.hbm [shape: bf16[16,16], index: 0, kind: input, shape index: {}]   ;;  %s1470_s1 = inlined_call_operand.hbm [shape: bf16[16,32], index: 1, kind: input, shape index: {}]   ;;  %s1471_s2 = inlined_call_operand.hbm [shape: bf16[16,128], index: 2, kind: input, shape index: {}]   ;;  %s1472_s3 = inlined_call_operand.vmem [shape: f32[1,128], index: 3, kind: input, shape index: {}]   ;;  %s1473_s4 = inlined_call_operand.hbm [shape: bf16[32,128], index: 4, kind: input, shape index: {}]   ;;  %s1474_s5 = inlined_call_operand.vmem [shape: f32[1,128], index: 5, kind: input, shape index: {}]   ;;  %s1475_s6 = inlined_call_operand.hbm [shape: bf16[128,128], index: 6, kind: input, shape index: {}]   ;;  %s1476_s7 = inlined_call_operand.vmem [shape: f32[1,128], index: 7, kind: input, shape index: {}]   ;;  %s1477_s8 = inlined_call_operand.hbm [shape: f32[16,128], index: 8, kind: output, shape index: {}]  }
   0x1   :  { %1483 = sst [smem:[#allocation19_spill]] %s1471_s2 }
   0x2   :  { %1484 = sst [smem:[#allocation20_spill]] %s1473_s4 }
   0x3   :  { %1485 = sst [smem:[#allocation21_spill]] %s1475_s6 }
   0x4   :  { %13 = vsyncpa [#allocation3], 0 }
   0x5   :  { %15 = vsyncpa [#allocation3 + $0x1], 0 }
   0x6   :  { %16 = vsyncpa [#allocation6], 0 }
   0x7   :  { %18 = vsyncpa [#allocation6 + $0x1], 0 }
   0x8   :  { %19 = vsyncpa [#allocation9], 0 }
   0x9   :  { %20 = vsyncpa [#allocation4], 0 }
   0xa   :  { %22 = vsyncpa [#allocation4 + $0x1], 0  ;;  %s1231_s27 = smov 0   ;;  %s1233_s28 = smov 0  }
   0xb   :  { %s1235_s29 = smov 0   ;;  %s1237_s30 = smov 0  }
   0xc LB: > { %1486 = sst [smem:[#allocation17_spill]] %s1170_s29  ;;  %s1252_s9 = sadd.s32 4294967295, %s1174_s30   ;;  %s1174_s30 = sphi %s1237_s30, %s1511_s30   ;;  %s1170_s29 = sphi %s1235_s29, %s1508_s29   ;;  %s1166_s28 = sphi %s1233_s28, %s1510_s28   ;;  %s1162_s27 = sphi %s1231_s27, %s1509_s27  }
   0xd   : > { %s782_s10 = sadd.s32 4294967294, %s1174_s30   ;;  %p48_p0 = scmp.ne.s32.totalorder %s1166_s28, %s1162_s27 }
   0xe   : > { %p1478_p1 = scmp.eq.s32.totalorder %s1252_s9, 0  ;;  %p230_p3 = scmp.eq.s32.totalorder %s782_s10, 1 }
   0xf   : > { %p783_p5 = scmp.ge.s32.totalorder %s1174_s30, 1  ;;  %p237_p7 = scmp.lt.s32.totalorder %s1174_s30, 3 }
  0x10   : > { %p1261_p4 = por %p1478_p1, %p48_p0  ;;  %p1266_p6 = por %p230_p3, %p48_p0 }
  0x11   : > { %p1271_p8 = pnand %p783_p5, %p237_p7  ;;  %s1176_s14 = smov [#allocation7]  }
  0x12   : > { %s1487_s11 = scalar_select %p1261_p4, 1, 0 }
  0x13   : > { %s1488_s12 = scalar_select %p1266_p6, 1, 0 }
  0x14   : > { %s1489_s13 = scalar_select %p1271_p8, 1, 0 }
  0x15   : > { %s249_s15 = sshll.u32 %s1176_s14, 4  ;;  %p885_p9 = pneg %p1271_p8  ;;  %s250_s15 = int_to_ptr.vmem [resolvable:$true] %s249_s15 }
  0x16   : > { %s1177_s17 = smov [#allocation8]   ;;  %s1178_s19 = smov [#allocation10]  }
  0x17   : > { %p1280_p11 = pnand %p885_p9, %p1478_p1  ;;  %s265_s18 = sshll.u32 %s1177_s17, 4  ;;  %s266_s18 = int_to_ptr.vmem [resolvable:$true] %s265_s18 }
  0x18   : > { %s281_s20 = sshll.u32 %s1178_s19, 4  ;;  %s975_s21 = scalar_lea.vmem %s250_s15, 128  ;;  %s282_s20 = int_to_ptr.vmem [resolvable:$true] %s281_s20 }
  0x19   : > { %p966_p12 = pneg %p1280_p11  ;;  %p976_p13 = scmp.ne.s32.totalorder %s250_s15, %s975_s21 }
  0x1a   : > { %p983_p5 = scmp.lt.s32.totalorder %s250_s15, %s250_s15  ;;  %p984_p7 = scmp.lt.s32.totalorder %s975_s21, %s975_s21 }
  0x1b   : > { %p978_p0 = pnand %p976_p13, %p966_p12 }
  0x1c   : > { %p985_p9 = por %p984_p7, %p983_p5 }
  0x1d   : > { %p979_p3 = pneg %p978_p0 }
  0x1f   : > { %p986_p10 = pnand %p985_p9, %p979_p3 }
  0x21   : > { %989 = shalt.err (!%p986_p10)
}
  0x22   : > { %s1179_s22 = smov 64   ;;  %s1180_s23 = smov 4  }
  0x23   : > { %s1491_s2 = sld [smem:[#allocation19_spill]]  ;;  %s1001_s26 = scalar_lea.vmem %s266_s18, 256 }
  0x24   : > { %p1002_p1 = scmp.ne.s32.totalorder %s266_s18, %s1001_s26  ;;  %p1009_p2 = scmp.lt.s32.totalorder %s266_s18, %s266_s18 }
  0x25   : > { %p1010_p6 = scmp.lt.s32.totalorder %s1001_s26, %s1001_s26 }
  0x26   : > { %p1004_p13 = pnand %p1002_p1, %p966_p12 }
  0x27   : > { %p1011_p5 = por %p1010_p6, %p1009_p2 }
  0x28   : > { %p1005_p0 = pneg %p1004_p13 }
  0x29   : > { %888 = dma.hbm_to_vmem [thread:$0]  (!%p1280_p11), %s1491_s2, 128, %s250_s15, [#allocation6], %s1179_s22, %s1179_s22, %s1180_s23  }
  0x2a   : > { %p1012_p3 = pnand %p1011_p5, %p1005_p0 }
  0x2c   : > { %1015 = shalt.err (!%p1012_p3)
}
  0x2d   : > { %s1492_s4 = sld [smem:[#allocation20_spill]]  ;;  %s1027_s15 = scalar_lea.vmem %s282_s20, 1024 }
  0x2e   : > { %p1028_p10 = scmp.ne.s32.totalorder %s282_s20, %s1027_s15  ;;  %p1035_p9 = scmp.lt.s32.totalorder %s282_s20, %s282_s20 }
  0x2f   : > { %p1036_p13 = scmp.lt.s32.totalorder %s1027_s15, %s1027_s15 }
  0x30   : > { %p1030_p7 = pnand %p1028_p10, %p966_p12 }
  0x31   : > { %p1037_p4 = por %p1036_p13, %p1035_p9 }
  0x32   : > { %p1031_p1 = pneg %p1030_p7 }
  0x33   : > { %891 = dma.hbm_to_vmem [thread:$0]  (!%p1280_p11), %s1492_s4, 256, %s266_s18, [#allocation9], %s1179_s22, %s1179_s22, %s1180_s23  }
  0x34   : > { %p1038_p2 = pnand %p1037_p4, %p1031_p1 }
  0x36   : > { %1041 = shalt.err (!%p1038_p2)
}
  0x37   : > { %s1493_s6 = sld [smem:[#allocation21_spill]]  ;;  %s1311_s18 = sadd.s32 1, %s1174_s30  }
  0x38   : > { %s32_s21 = ssub.s32 %s1174_s30, %s1311_s18  ;;  %s35_s16 = sadd.s32 1, %s1170_s29 }
  0x39   : > { %p33_p4 = scmp.eq.s32.totalorder %s32_s21, 0  ;;  %p42_p6 = scmp.ne.s32.totalorder %s1170_s29, %s1166_s28 }
  0x3a   : > { %p43_p12 = scmp.eq.s32.totalorder %s1174_s30, 0  ;;  %p909_p0 = scmp.lt.s32.totalorder %s1174_s30, 2 }
  0x3b   : > { %s1321_s24 = scalar_select %p33_p4, %s1170_s29, %s35_s16  }
  0x3c   : > { %p44_p5 = por %p43_p12, %p42_p6  ;;  %p1495_p3 = scmp.eq.s32.totalorder %s1252_s9, 1 }
  0x3d   : > { %894 = dma.hbm_to_vmem [thread:$0]  (!%p1280_p11), %s1493_s6, 1024, %s282_s20, [#allocation9], %s1179_s22, %s1179_s22, %s1180_s23  }
  0x3e   : > { %1494 = sst [smem:[#allocation18_spill]] %s1321_s24  ;;  %p1325_p10 = por %p1495_p3, %p42_p6 }
  0x3f   : > { %s298_s26 = sand.u32 1, %s1170_s29   ;;  %s789_s10 = sshll.u32 %s1174_s30, 6 }
  0x40   : > { %s1496_s25 = scalar_select %p1325_p10, 1, 0 }
  0x41   : > { %s1331_s20 = sshll.u32 %s298_s26, 2  ;;  %s1336_s14 = scalar_lea.hbm %s1469_s0, %s789_s10 }
  0x42   : > { %s302_s15 = scalar_lea.vmem [#allocation2], %s1331_s20  ;;  %p1339_p11 = pnand %p909_p0, %p44_p5 }
  0x43   : > { %s309_s17 = sshll.u32 %s302_s15, 4  ;;  %s1346_s2 = scalar_lea.hbm %s1470_s1, %s789_s10  ;;  %s310_s17 = int_to_ptr.vmem [resolvable:$true] %s309_s17 }
  0x44   : > { %s299_s22 = scalar_lea.sflag [#allocation3], %s298_s26  ;;  %s1042_s23 = scalar_lea.hbm %s1336_s14, 64 }
  0x45   : > { %p1043_p7 = scmp.ne.s32.totalorder %s1336_s14, %s1042_s23  ;;  %p1044_p1 = pneg %p1339_p11 }
  0x46   : > { %s1047_s6 = scalar_lea.hbm %s1469_s0, 128  ;;  %p1048_p2 = scmp.lt.s32.totalorder %s1336_s14, %s1469_s0 }
  0x47   : > { %p1045_p9 = pnand %p1044_p1, %p1043_p7  ;;  %p1049_p4 = scmp.lt.s32.totalorder %s1047_s6, %s1042_s23 }
  0x49   : > { %p1046_p13 = pneg %p1045_p9  ;;  %p1050_p6 = por %p1049_p4, %p1048_p2 }
  0x4b   : > { %p1051_p12 = pnand %p1050_p6, %p1046_p13 }
  0x4d   : > { %1054 = shalt.err (!%p1051_p12)
}
  0x4e   : > { %s1055_s26 = scalar_lea.vmem %s310_s17, 64  ;;  %s1181_s10 = smov [#allocation2]  }
  0x4f   : > { %p1056_p0 = scmp.ne.s32.totalorder %s310_s17, %s1055_s26  ;;  %s1060_s21 = sshll.u32 %s1181_s10, 4  ;;  %s1061_s21 = int_to_ptr.vmem [resolvable:$false] %s1060_s21 }
  0x50   : > { %s1062_s4 = scalar_lea.vmem %s1061_s21, 128  ;;  %p1063_p7 = scmp.lt.s32.totalorder %s310_s17, %s1061_s21 }
  0x51   : > { %p1058_p5 = pnand %p1056_p0, %p1044_p1  ;;  %p1064_p9 = scmp.lt.s32.totalorder %s1062_s4, %s1055_s26 }
  0x53   : > { %p1059_p3 = pneg %p1058_p5  ;;  %p1065_p10 = por %p1064_p9, %p1063_p7 }
  0x55   : > { %p1066_p8 = pnand %p1065_p10, %p1059_p3 }
  0x57   : > { %1069 = shalt.err (!%p1066_p8)
}
  0x58   : > { %898 = dma.hbm_to_vmem [thread:$0]  (!%p1339_p11), %s1336_s14, 64, %s310_s17, %s299_s22  }
  0x59   : > { %s316_s6 = sand.u32 1, %s1174_s30   ;;  %s320_s29 = scalar_lea.vmem [#allocation5], %s1331_s20 }
  0x5a   : > { %s327_s24 = sshll.u32 %s320_s29, 4  ;;  %s317_s16 = scalar_lea.sflag [#allocation6], %s316_s6  ;;  %s328_s24 = int_to_ptr.vmem [resolvable:$true] %s327_s24 }
  0x5b   : > { %s1070_s23 = scalar_lea.hbm %s1346_s2, 64  ;;  %s1075_s10 = scalar_lea.hbm %s1470_s1, 128 }
  0x5c   : > { %p1071_p13 = scmp.ne.s32.totalorder %s1346_s2, %s1070_s23  ;;  %p1076_p2 = scmp.lt.s32.totalorder %s1346_s2, %s1470_s1 }
  0x5d   : > { %p1077_p4 = scmp.lt.s32.totalorder %s1075_s10, %s1070_s23 }
  0x5e   : > { %p1073_p8 = pnand %p1071_p13, %p1044_p1 }
  0x5f   : > { %p1078_p6 = por %p1077_p4, %p1076_p2 }
  0x60   : > { %p1074_p10 = pneg %p1073_p8 }
  0x62   : > { %p1079_p12 = pnand %p1078_p6, %p1074_p10 }
  0x64   : > { %1082 = shalt.err (!%p1079_p12)
}
  0x65   : > { %s1083_s20 = scalar_lea.vmem %s328_s24, 64  ;;  %s1182_s14 = smov [#allocation5]  }
  0x66   : > { %p1084_p0 = scmp.ne.s32.totalorder %s328_s24, %s1083_s20  ;;  %s1088_s17 = sshll.u32 %s1182_s14, 4  ;;  %s1089_s17 = int_to_ptr.vmem [resolvable:$false] %s1088_s17 }
  0x67   : > { %s1090_s22 = scalar_lea.vmem %s1089_s17, 128  ;;  %p1091_p7 = scmp.lt.s32.totalorder %s328_s24, %s1089_s17 }
  0x68   : > { %p1086_p5 = pnand %p1084_p0, %p1044_p1  ;;  %p1092_p9 = scmp.lt.s32.totalorder %s1090_s22, %s1083_s20 }
  0x6a   : > { %p1087_p3 = pneg %p1086_p5  ;;  %p1093_p13 = por %p1092_p9, %p1091_p7 }
  0x6c   : > { %p1094_p8 = pnand %p1093_p13, %p1087_p3 }
  0x6e   : > { %1097 = shalt.err (!%p1094_p8)
}
  0x6f   : > { %901 = dma.hbm_to_vmem [thread:$0]  (!%p1339_p11), %s1346_s2, 64, %s328_s24, %s317_s16  }
  0x70   : > { %p1498_p10 = scmp.ne.s32.totalorder %s1489_s13, 0 }
  0x71   : > { %s1391_s6 = sand.u32 (!%p1498_p10), 1, %s1166_s28   ;;  %p1499_p1 = scmp.ne.s32.totalorder (!%p1498_p10), %s1487_s11, 0 }
  0x72   : > { %336 = sbr.rel (%p1498_p10) target bundleno = 556 (0x22c), region = 52  ;;  %s793_s29 = sshll.u32 (!%p1498_p10), %s1391_s6, 2 }
  0x73   : > { %s339_s23 = scalar_lea.sflag (!%p1498_p10), [#allocation3], %s1391_s6  ;;  %s342_s15 = scalar_lea.vmem (!%p1498_p10), [#allocation2], %s793_s29 }
  0x77   : > { %1141 = dma.done.wait (%p1499_p1), %s339_s23, 64  }
  0x78   : > { %1143 = vsyncadd (%p1499_p1), %s339_s23, 4294967232  ;;  %s347_s2 = sand.u32 1, %s1252_s9   ;;  %s351_s13 = scalar_lea.vmem [#allocation5], %s793_s29 }
  0x79   : > { %s348_s19 = scalar_lea.sflag [#allocation6], %s347_s2 }
  0x7a   : > { %1145 = dma.done.wait (%p1499_p1), %s348_s19, 64  }
  0x7b   : > { %1147 = vsyncadd (%p1499_p1), %s348_s19, 4294967232  ;;  %p1500_p11 = scmp.eq.s32.totalorder %s1252_s9, 0 }
  0x7d   : > { %1149 = dma.done.wait (%p1500_p11), [#allocation6], 128   ;;  %p1501_p2 = pmov %p1500_p11 }
  0x7f   : > { %1151 = vsyncadd (%p1501_p2), [#allocation6], 4294967168  ;;  %p1502_p4 = pmov %p1501_p2 }
  0x80   : > { %p1503_p6 = pmov %p1501_p2 }
  0x81   : > { %1153 = dma.done.wait (%p1502_p4), [#allocation9], 1280  }
  0x82   : > { %1155 = vsyncadd (%p1503_p6), [#allocation9], 4294966016  ;;  %v1183_v0 = vmov 0.0   ;;  %vm1184_vm0 = vmmov 0   ;;  %v953_v1 = vld [vmem:[#allocation7] sm:$0xff]   ;;  %vm418_vm1 = vcmask 130048  }
  0x83   : > { %833 = vmatprep.subr.bf16.mxu1 %v1183_v0  ;;  %835 = vmatprep.mubr.msk.bf16.mxu1 %vm1184_vm0, %v1183_v0  ;;  %v402_v2 = vld [vmem:[%s342_s15] sm:$0xf]  ;;  %v955_v5 = vld [vmem:[#allocation8] sm:$0xff]   ;;  %vm487_vm2 = vcmask 261120   ;;  %v463_v7 = vld [vmem:[%s351_s13] sm:$0xf] }
  0x84   : > { %847 = vmatprep.subr.bf16.mxu0 %v1183_v0  ;;  %863 = vmatprep.mubr.msk.bf16.mxu0 %vm1184_vm0, %v1183_v0  ;;  %v954_v3 = vld [vmem:[#allocation8 + $0x8] sm:$0xff]   ;;  %v957_v6 = vld [vmem:[#allocation10 + $0x30] sm:$0xff]   ;;  %v958_v8 = vld [vmem:[#allocation10 + $0x28] sm:$0xff]   ;;  %s798_s10 = sshll.u32 %s1391_s6, 3  ;;  %s816_s20 = sshll.u32 %s1252_s9, 7 }
  0x85   : > { %834 = vmatpush3.bf16.msra.mxu1 %v953_v1  ;;  %v956_v4 = vld [vmem:[#allocation10 + $0x38] sm:$0xff]   ;;  %v959_v9 = vld [vmem:[#allocation10 + $0x20] sm:$0xff]   ;;  %v961_v11 = vld [vmem:[#allocation10 + $0x10] sm:$0xff]   ;;  %s400_s14 = scalar_lea.vmem [#allocation11], %s798_s10  ;;  %s1426_s23 = scalar_lea.hbm %s1477_s8, %s816_s20 }
  0x86   : > { %839 = vmatprep.subr.bf16.mxu1 %v1183_v0  ;;  %848 = vmatpush3.bf16.msra.mxu0 %v956_v4  ;;  %v960_v10 = vld [vmem:[#allocation10 + $0x18] sm:$0xff]   ;;  %v962_v12 = vld [vmem:[#allocation10 + $0x8] sm:$0xff]   ;;  %v963_v13 = vld [vmem:[#allocation10] sm:$0xff]   ;;  %s661_s17 = sshll.u32 %s400_s14, 4  ;;  %s648_s15 = scalar_lea.sflag [#allocation4], %s1391_s6  ;;  %s1428_s17 = int_to_ptr.vmem [resolvable:$true] %s661_s17 }
  0x87   : > { %849 = vmatprep.subr.bf16.mxu0 %v1183_v0  ;;  %v799_v16 = vld [vmem:[%s1472_s3] ss:$0 sm:$0xff]  ;;  %s1098_s9 = scalar_lea.vmem %s1428_s17, 128  ;;  %p1504_p0 = scmp.ne.s32.totalorder %s1496_s25, 0 }
  0x88   : > { %836 = vmatmul.mubr.msk.bf16.vlgmr.msra.gmra.mxu1 %vm418_vm1, %v402_v2  ;;  %v802_v19 = vld [vmem:[%s1474_s5] ss:$0 sm:$0xff]  ;;  %p1099_p12 = scmp.ne.s32.totalorder %s1428_s17, %s1098_s9  ;;  %s1185_s2 = smov [#allocation11]  }
  0x89   : > { %840 = vmatpush3.bf16.msra.mxu1 %v954_v3  ;;  %843 = vmatprep.mubr.msk.bf16.mxu1 %vm1184_vm0, %v1183_v0  ;;  %v806_v30 = vld [vmem:[%s1476_s7] ss:$0 sm:$0xff]  ;;  %s1102_s19 = sshll.u32 %s1185_s2, 4  ;;  %s1103_s19 = int_to_ptr.vmem [resolvable:$false] %s1102_s19 }
  0x8a   : > { %841 = vmatprep.subr.bf16.mxu1 %v1183_v0  ;;  %850 = vmatpush3.bf16.msra.mxu0 %v957_v6  ;;  %p1100_p5 = pnand %p1099_p12, %p1504_p0  ;;  %s1104_s13 = scalar_lea.vmem %s1103_s19, 256 }
  0x8b   : > { %851 = vmatprep.subr.bf16.mxu0 %v1183_v0  ;;  %p1105_p7 = scmp.lt.s32.totalorder %s1428_s17, %s1103_s19  ;;  %p1106_p9 = scmp.lt.s32.totalorder %s1104_s13, %s1098_s9 }
  0x8c   : > { %p1101_p3 = pneg %p1100_p5 }
  0x8d   : > { %842 = vmatpush3.bf16.msra.mxu1 %v955_v5  ;;  %p1107_p13 = por %p1106_p9, %p1105_p7 }
  0x8e   : > { %852 = vmatpush3.bf16.msra.mxu0 %v958_v8 }
  0x8f   : > { %853 = vmatprep.subr.bf16.mxu0 %v1183_v0  ;;  %p1108_p8 = pnand %p1107_p13, %p1101_p3 }
  0x90   : > { %844 = vmatmul.mubr.msk.bf16.vlgmr.msra.gmra.mxu1 %vm487_vm2, %v463_v7 }
  0x92   : > { %854 = vmatpush3.bf16.msra.mxu0 %v959_v9 }
  0x93   : > { %855 = vmatprep.subr.bf16.mxu0 %v1183_v0 }
  0x96   : > { %856 = vmatpush3.bf16.msra.mxu0 %v960_v10 }
  0x97   : > { %857 = vmatprep.subr.bf16.mxu0 %v1183_v0 }
  0x9a   : > { %858 = vmatpush3.bf16.msra.mxu0 %v961_v11 }
  0x9b   : > { %859 = vmatprep.subr.bf16.mxu0 %v1183_v0 }
  0x9e   : > { %860 = vmatpush3.bf16.msra.mxu0 %v962_v12 }
  0x9f   : > { %861 = vmatprep.subr.bf16.mxu0 %v1183_v0 }
  0xa2   : > { %862 = vmatpush3.bf16.msra.mxu0 %v963_v13 }
 0x148   : > { %v456_v14 = vpop.f32.mrf.mxu1 }
 0x149   : > { %v457_v20 = vadd.f32 %v799_v16, %v456_v14 }
 0x14a   : > { %v837_v15 = vpop.f32.mrf.mxu1 }
 0x14b   : > { %v462_v24 = vmax.f32 %v457_v20, 0.0 }
 0x14c   : > { %v459_v17 = vpop.f32.mrf.mxu1 }
 0x14e   : > { %v838_v18 = vpop.f32.mrf.mxu1 }
 0x150   : > { %v525_v21 = vpop.f32.mrf.mxu1 }
 0x151   : > { %v526_v22 = vadd.f32 %v802_v19, %v525_v21 }
 0x152   : > { %v845_v23 = vpop.f32.mrf.mxu1 }
 0x153   : > { %v531_v25 = vmax.f32 %v526_v22, 0.0 }
 0x154   : > { %v528_v26 = vpop.f32.mrf.mxu1 }
 0x155   : > { %v532_v27 = vmul.f32 %v531_v25, %v462_v24 }
 0x156   : > { %v846_v28 = vpop.f32.mrf.mxu1 }
 0x157   : > { %v533_v29 = vpack.c.bf16 %v532_v27, %v532_v27 }
 0x159   : > { %864 = vmatmul.mubr.bf16.vlgmr.msra.gmra.mxu0 %v533_v29 }
 0x219   : > { %v639_v31 = vpop.f32.mrf.mxu0 }
 0x21a   : > { %v640_v32 = vadd.f32 %v806_v30, %v639_v31 }
 0x21b   : > { %v865_v33 = vpop.f32.mrf.mxu0 }
 0x21c   : > { %v645_v34 = vmax.f32 %v640_v32, 0.0 }
 0x21d   : > { %v642_v35 = vpop.f32.mrf.mxu0 }
 0x21e   : > { %646 = vst [vmem:[%s400_s14] sm:$0xff] %v645_v34 }
 0x21f   : > { %v866_v36 = vpop.f32.mrf.mxu0 }
 0x220   : > { %1111 = shalt.err (!%p1108_p8)
}
 0x221   : > { %s1112_s11 = scalar_lea.hbm %s1426_s23, 128  ;;  %s1116_s16 = scalar_lea.hbm %s1477_s8, 256 }
 0x222   : > { %p1113_p10 = scmp.ne.s32.totalorder %s1426_s23, %s1112_s11  ;;  %p1117_p2 = scmp.lt.s32.totalorder %s1426_s23, %s1477_s8 }
 0x223   : > { %p1118_p4 = scmp.lt.s32.totalorder %s1116_s16, %s1112_s11 }
 0x224   : > { %p1114_p1 = pnand %p1113_p10, %p1504_p0 }
 0x225   : > { %p1119_p6 = por %p1118_p4, %p1117_p2 }
 0x226   : > { %p1115_p11 = pneg %p1114_p1 }
 0x228   : > { %p1120_p12 = pnand %p1119_p6, %p1115_p11 }
 0x22a   : > { %1123 = shalt.err (!%p1120_p12)
}
 0x22b   : > { %883 = dma.vmem_to_hbm [thread:$0]  (%p1504_p0), %s1428_s17, 128, %s1426_s23, %s648_s15  }
 0x22c PF: > { %s673_s21 = sand.u32 1, %s1162_s27   ;;  %p1505_p5 = scmp.ne.s32.totalorder %s1488_s12, 0 }
 0x22d   : > { %p1506_p3 = scmp.ge.s32.totalorder %s1174_s30, 2  ;;  %s674_s4 = scalar_lea.sflag [#allocation4], %s673_s21 }
 0x22f   : > { %p903_p7 = pnand %p1506_p3, %p1505_p5 }
 0x231   : > { %p904_p9 = pneg %p903_p7 }
 0x233   : > { %1157 = dma.done.wait (%p904_p9), %s674_s4, 128  }
 0x234   : > { %1159 = vsyncadd (%p904_p9), %s674_s4, 4294967168  ;;  %s1507_s20 = sld [smem:[#allocation17_spill]]  ;;  %p25_p13 = scmp.ge.s32.totalorder %s1311_s18, 4  }
 0x235   : > { %s1508_s29 = sld [smem:[#allocation18_spill]]  ;;  %s1509_s27 = smov %s1166_s28 }
 0x236   : > { %s1511_s30 = smov %s1311_s18  ;;  %27 = sbr.rel (!%p25_p13) target bundleno = 12 (0xc), region = 122 }
 0x23a   : > { %s1510_s28 = smov %s1507_s20 }
 0x23b   :  { %679 = vsyncpa [#allocation3], 1 }
 0x23c   :  { %681 = vsyncpa [#allocation3 + $0x1], 1 }
 0x23d   :  { %682 = vsyncpa [#allocation6], 1 }
 0x23e   :  { %684 = vsyncpa [#allocation6 + $0x1], 1 }
 0x23f   :  { %685 = vsyncpa [#allocation9], 1 }
 0x240   :  { %686 = vsyncpa [#allocation4], 1 }
 0x241   :  { %688 = vsyncpa [#allocation4 + $0x1], 1 }

</bundles_post_ra>
